<compile_context>
chip_gen: v7x
topology: tpu7x:2x2x1
jax: 0.10.0
libtpu: 0.0.40
codegen_flags: <defaults>
</compile_context>

<pallas_src>
import math
from functools import partial

import jax
import jax.numpy as jnp
from jax.experimental import pallas as pl
from jax.experimental.pallas import tpu as pltpu


def _gru_decoder_kernel(h0_ref, wg_ref, bias_ref, wfc_ref, bfc_ref, out_ref):
    """Whole decoder in one invocation: unrolled GRU recurrence + per-step fc store."""
    B, H = h0_ref.shape
    O = wfc_ref.shape[1]
    T = out_ref.shape[1] // O

    # Load all parameters once (outside the unrolled time loop).
    h = h0_ref[...].astype(jnp.float32)            # [B, H]
    w_g = wg_ref[...]                              # [H, 3H]  columns ordered (r | z | n)
    bias = bias_ref[...]                           # [2, 3H]
    b_g = bias[0:1, :]                             # [1, 3H]: (b_ir+b_hr | b_iz+b_hz | b_hn)
    b_in = bias[1:2, :H]                           # [1, H]
    w_fc = wfc_ref[...]                            # [H, O]
    b_fc = bfc_ref[...]                            # [1, O]

    for t in range(T):                             # static unroll: T is small and known
        # One fused gate matmul per step; slices of the [B, 3H] result are free lane ops.
        g = jnp.dot(h, w_g, preferred_element_type=jnp.float32) + b_g      # [B, 3H]
        rz = jax.nn.sigmoid(g[:, :2 * H])          # one sigmoid over fused r|z lanes
        r = rz[:, :H]
        z = rz[:, H:]
        n = jnp.tanh(b_in + r * g[:, 2 * H:])
        h = (1.0 - z) * n + z * h                  # [B, H]

        # fc projection (off the recurrence critical path), batch-first lane-offset store.
        out_t = jnp.dot(h, w_fc, preferred_element_type=jnp.float32) + b_fc  # [B, O]
        out_ref[:, t * O:(t + 1) * O] = out_t.astype(out_ref.dtype)


@partial(jax.jit, static_argnames=("seq_length",))
def temporal_decoder_forward(latent_B, params, seq_length):
    """latent_B: [B, H] -> [B, seq_length, O] (batch_first, like the PyTorch module)."""
    B, H = latent_B.shape
    O = params["w_fc"].shape[1]
    T = int(seq_length)

    # ---- cheap one-time parameter prep (a few hundred bytes, fused under jit) ----
    b_ih, b_hh = params["b_ih"], params["b_hh"]          # [1, 3H] each, gate order r,z,n
    b_r = b_ih[:, :H] + b_hh[:, :H]                      # folded r-gate bias
    b_z = b_ih[:, H:2 * H] + b_hh[:, H:2 * H]            # folded z-gate bias
    b_hn = b_hh[:, 2 * H:]                               # inside r*(...) term
    b_in = b_ih[:, 2 * H:]                               # outside r*(...) term
    bias_row0 = jnp.concatenate([b_r, b_z, b_hn], axis=1)                       # [1, 3H]
    bias_row1 = jnp.concatenate([b_in, jnp.zeros((1, 2 * H), jnp.float32)], 1)  # [1, 3H]
    bias2 = jnp.concatenate([bias_row0, bias_row1], axis=0)                     # [2, 3H]

    out_flat = pl.pallas_call(
        _gru_decoder_kernel,
        out_shape=jax.ShapeDtypeStruct((B, T * O), jnp.float32),
        grid_spec=pltpu.PrefetchScalarGridSpec(
            num_scalar_prefetch=0,
            grid=(1,),                                           # single invocation
            in_specs=[
                pl.BlockSpec((B, H), lambda i: (0, 0)),          # latent_B (h_0)
                pl.BlockSpec((H, 3 * H), lambda i: (0, 0)),      # W_hh^T  (r | z | n)
                pl.BlockSpec((2, 3 * H), lambda i: (0, 0)),      # consolidated bias tile
                pl.BlockSpec((H, O), lambda i: (0, 0)),          # W_fc^T
                pl.BlockSpec((1, O), lambda i: (0, 0)),          # b_fc
            ],
            out_specs=pl.BlockSpec((B, T * O), lambda i: (0, 0)),
        ),
        compiler_params=pltpu.CompilerParams(
            dimension_semantics=("arbitrary",),
        ),
    )(latent_B, params["w_hh"], bias2, params["w_fc"], params["b_fc"])

    # Contiguous reshape only (free) -> [B, T, O].
    return out_flat.reshape(B, T, O)


def init_params(key, latent_dim_B, output_size):
    """Deterministic synthetic parameters matching the PyTorch module's shapes.

    nn.GRU(input_size=O, hidden_size=H): weight_hh (3H, H), bias_ih (3H,), bias_hh (3H,).
    (weight_ih is unused because the GRU inputs are all zeros.)
    nn.Linear(H, O): weight (O, H), bias (O,).
    Weights are stored pre-transposed for right-multiplication inside the kernel.
    """
    H, O = latent_dim_B, output_size
    k = 1.0 / math.sqrt(H)
    ks = jax.random.split(key, 5)
    return {
        "w_hh": jax.random.uniform(ks[0], (H, 3 * H), jnp.float32, -k, k),
        "b_ih": jax.random.uniform(ks[1], (1, 3 * H), jnp.float32, -k, k),
        "b_hh": jax.random.uniform(ks[2], (1, 3 * H), jnp.float32, -k, k),
        "w_fc": jax.random.uniform(ks[3], (H, O), jnp.float32, -k, k),
        "b_fc": jax.random.uniform(ks[4], (1, O), jnp.float32, -k, k),
    }


def _reference_forward(latent_B, params, seq_length):
    """Pure-JAX reference (same math, original fused params) for a correctness check."""
    whh, bih, bhh, wfc, bfc = (params["w_hh"], params["b_ih"], params["b_hh"],
                               params["w_fc"], params["b_fc"])
    H = latent_B.shape[1]

    def step(h, _):
        hh = h @ whh + bhh
        r = jax.nn.sigmoid(hh[:, :H] + bih[:, :H])
        z = jax.nn.sigmoid(hh[:, H:2 * H] + bih[:, H:2 * H])
        n = jnp.tanh(bih[:, 2 * H:] + r * hh[:, 2 * H:])
        h_new = (1.0 - z) * n + z * h
        return h_new, h_new @ wfc + bfc

    _, outs = jax.lax.scan(step, latent_B.astype(jnp.float32), None, length=seq_length)
    return jnp.transpose(outs, (1, 0, 2))


if __name__ == "__main__":
    batch = 2
    latent_dim_B = 8      # GRU hidden size
    output_size = 64      # latent_dim_A
    seq_length = 8

    key = jax.random.PRNGKey(0)
    k_param, k_input = jax.random.split(key)
    params = init_params(k_param, latent_dim_B, output_size)
    latent_B = jax.random.normal(k_input, (batch, latent_dim_B), jnp.float32)

    out = temporal_decoder_forward(latent_B, params, seq_length)
    out = jax.block_until_ready(out)

    assert out.shape == (batch, seq_length, output_size), out.shape

    ref = _reference_forward(latent_B, params, seq_length)
    max_err = float(jnp.max(jnp.abs(out - ref)))
    assert jnp.allclose(out, ref, atol=1e-4, rtol=1e-4), max_err

    print("KERNEL_OK")
</pallas_src>

<mosaic_0001>
module attributes {stable_mosaic.version = 11 : i64} {
  func.func @_gru_decoder_kernel(%arg0: i32, %arg1: memref<2x8xf32, #tpu.memory_space<vmem>>, %arg2: memref<8x24xf32, #tpu.memory_space<vmem>>, %arg3: memref<2x24xf32, #tpu.memory_space<vmem>>, %arg4: memref<8x64xf32, #tpu.memory_space<vmem>>, %arg5: memref<1x64xf32, #tpu.memory_space<vmem>>, %arg6: memref<2x512xf32, #tpu.memory_space<vmem>>) attributes {dimension_semantics = [#tpu.dimension_semantics<arbitrary>], iteration_bounds = array<i64: 1>, scalar_prefetch = 0 : i64, scratch_operands = 0 : i64, tpu.core_type = #tpu.core_type<tc>, window_params = [{pipeline_mode = #tpu.pipeline_mode<synchronous>, transform_indices = @transform_0, window_bounds = array<i64: 2, 8>}, {pipeline_mode = #tpu.pipeline_mode<synchronous>, transform_indices = @transform_1, window_bounds = array<i64: 8, 24>}, {pipeline_mode = #tpu.pipeline_mode<synchronous>, transform_indices = @transform_2, window_bounds = array<i64: 2, 24>}, {pipeline_mode = #tpu.pipeline_mode<synchronous>, transform_indices = @transform_3, window_bounds = array<i64: 8, 64>}, {pipeline_mode = #tpu.pipeline_mode<synchronous>, transform_indices = @transform_4, window_bounds = array<i64: 1, 64>}, {pipeline_mode = #tpu.pipeline_mode<synchronous>, transform_indices = @transform_5, window_bounds = array<i64: 2, 512>}]} {
    %c0 = arith.constant 0 : index
    %c0_0 = arith.constant 0 : index
    %0 = vector.load %arg1[%c0, %c0_0] : memref<2x8xf32, #tpu.memory_space<vmem>>, vector<2x8xf32>
    %c0_1 = arith.constant 0 : index
    %c0_2 = arith.constant 0 : index
    %1 = vector.load %arg2[%c0_1, %c0_2] : memref<8x24xf32, #tpu.memory_space<vmem>>, vector<8x24xf32>
    %c0_3 = arith.constant 0 : index
    %c0_4 = arith.constant 0 : index
    %2 = vector.load %arg3[%c0_3, %c0_4] : memref<2x24xf32, #tpu.memory_space<vmem>>, vector<2x24xf32>
    %3 = vector.extract_strided_slice %2 {offsets = [0, 0], sizes = [1, 24], strides = [1, 1]} : vector<2x24xf32> to vector<1x24xf32>
    %4 = vector.extract_strided_slice %2 {offsets = [1, 0], sizes = [1, 8], strides = [1, 1]} : vector<2x24xf32> to vector<1x8xf32>
    %c0_5 = arith.constant 0 : index
    %c0_6 = arith.constant 0 : index
    %5 = vector.load %arg4[%c0_5, %c0_6] : memref<8x64xf32, #tpu.memory_space<vmem>>, vector<8x64xf32>
    %c0_7 = arith.constant 0 : index
    %c0_8 = arith.constant 0 : index
    %6 = vector.load %arg5[%c0_7, %c0_8] : memref<1x64xf32, #tpu.memory_space<vmem>>, vector<1x64xf32>
    %cst = arith.constant dense<0.000000e+00> : vector<2x24xf32>
    %7 = tpu.matmul %0, %1, %cst {dimension_numbers = #tpu.dot_dimension_numbers<[1], [0], [0], [1], [0, 0, 1, 1], [], []>} : vector<2x8xf32>, vector<8x24xf32>, vector<2x24xf32> -> vector<2x24xf32>
    %8 = vector.broadcast %3 : vector<1x24xf32> to vector<2x24xf32>
    %9 = arith.addf %7, %8 : vector<2x24xf32>
    %10 = vector.extract_strided_slice %9 {offsets = [0, 0], sizes = [2, 16], strides = [1, 1]} : vector<2x24xf32> to vector<2x16xf32>
    %11 = arith.negf %10 : vector<2x16xf32>
    %12 = math.exp %11 : vector<2x16xf32>
    %cst_9 = arith.constant 1.000000e+00 : f32
    %13 = vector.broadcast %cst_9 : f32 to vector<2x16xf32>
    %14 = arith.addf %13, %12 : vector<2x16xf32>
    %15 = arith.divf %13, %14 : vector<2x16xf32>
    %16 = vector.extract_strided_slice %15 {offsets = [0, 0], sizes = [2, 8], strides = [1, 1]} : vector<2x16xf32> to vector<2x8xf32>
    %17 = vector.extract_strided_slice %15 {offsets = [0, 8], sizes = [2, 8], strides = [1, 1]} : vector<2x16xf32> to vector<2x8xf32>
    %18 = vector.extract_strided_slice %9 {offsets = [0, 16], sizes = [2, 8], strides = [1, 1]} : vector<2x24xf32> to vector<2x8xf32>
    %19 = arith.mulf %16, %18 : vector<2x8xf32>
    %20 = vector.broadcast %4 : vector<1x8xf32> to vector<2x8xf32>
    %21 = arith.addf %20, %19 : vector<2x8xf32>
    %22 = math.tanh %21 : vector<2x8xf32>
    %cst_10 = arith.constant 1.000000e+00 : f32
    %23 = vector.broadcast %cst_10 : f32 to vector<2x8xf32>
    %24 = arith.subf %23, %17 : vector<2x8xf32>
    %25 = arith.mulf %24, %22 : vector<2x8xf32>
    %26 = arith.mulf %17, %0 : vector<2x8xf32>
    %27 = arith.addf %25, %26 : vector<2x8xf32>
    %cst_11 = arith.constant dense<0.000000e+00> : vector<2x64xf32>
    %28 = tpu.matmul %27, %5, %cst_11 {dimension_numbers = #tpu.dot_dimension_numbers<[1], [0], [0], [1], [0, 0, 1, 1], [], []>} : vector<2x8xf32>, vector<8x64xf32>, vector<2x64xf32> -> vector<2x64xf32>
    %29 = vector.broadcast %6 : vector<1x64xf32> to vector<2x64xf32>
    %30 = arith.addf %28, %29 : vector<2x64xf32>
    %c0_12 = arith.constant 0 : index
    %c0_13 = arith.constant 0 : index
    %31 = vector.load %arg6[%c0_12, %c0_13] : memref<2x512xf32, #tpu.memory_space<vmem>>, vector<2x64xf32>
    tpu.vector_store %arg6[%c0_12, %c0_13], %30 {strides = array<i32>} : memref<2x512xf32, #tpu.memory_space<vmem>>, vector<2x64xf32>,
    %cst_14 = arith.constant dense<0.000000e+00> : vector<2x24xf32>
    %32 = tpu.matmul %27, %1, %cst_14 {dimension_numbers = #tpu.dot_dimension_numbers<[1], [0], [0], [1], [0, 0, 1, 1], [], []>} : vector<2x8xf32>, vector<8x24xf32>, vector<2x24xf32> -> vector<2x24xf32>
    %33 = vector.broadcast %3 : vector<1x24xf32> to vector<2x24xf32>
    %34 = arith.addf %32, %33 : vector<2x24xf32>
    %35 = vector.extract_strided_slice %34 {offsets = [0, 0], sizes = [2, 16], strides = [1, 1]} : vector<2x24xf32> to vector<2x16xf32>
    %36 = arith.negf %35 : vector<2x16xf32>
    %37 = math.exp %36 : vector<2x16xf32>
    %cst_15 = arith.constant 1.000000e+00 : f32
    %38 = vector.broadcast %cst_15 : f32 to vector<2x16xf32>
    %39 = arith.addf %38, %37 : vector<2x16xf32>
    %40 = arith.divf %38, %39 : vector<2x16xf32>
    %41 = vector.extract_strided_slice %40 {offsets = [0, 0], sizes = [2, 8], strides = [1, 1]} : vector<2x16xf32> to vector<2x8xf32>
    %42 = vector.extract_strided_slice %40 {offsets = [0, 8], sizes = [2, 8], strides = [1, 1]} : vector<2x16xf32> to vector<2x8xf32>
    %43 = vector.extract_strided_slice %34 {offsets = [0, 16], sizes = [2, 8], strides = [1, 1]} : vector<2x24xf32> to vector<2x8xf32>
    %44 = arith.mulf %41, %43 : vector<2x8xf32>
    %45 = vector.broadcast %4 : vector<1x8xf32> to vector<2x8xf32>
    %46 = arith.addf %45, %44 : vector<2x8xf32>
    %47 = math.tanh %46 : vector<2x8xf32>
    %cst_16 = arith.constant 1.000000e+00 : f32
    %48 = vector.broadcast %cst_16 : f32 to vector<2x8xf32>
    %49 = arith.subf %48, %42 : vector<2x8xf32>
    %50 = arith.mulf %49, %47 : vector<2x8xf32>
    %51 = arith.mulf %42, %27 : vector<2x8xf32>
    %52 = arith.addf %50, %51 : vector<2x8xf32>
    %cst_17 = arith.constant dense<0.000000e+00> : vector<2x64xf32>
    %53 = tpu.matmul %52, %5, %cst_17 {dimension_numbers = #tpu.dot_dimension_numbers<[1], [0], [0], [1], [0, 0, 1, 1], [], []>} : vector<2x8xf32>, vector<8x64xf32>, vector<2x64xf32> -> vector<2x64xf32>
    %54 = vector.broadcast %6 : vector<1x64xf32> to vector<2x64xf32>
    %55 = arith.addf %53, %54 : vector<2x64xf32>
    %c0_18 = arith.constant 0 : index
    %c64 = arith.constant 64 : index
    %56 = vector.load %arg6[%c0_18, %c64] : memref<2x512xf32, #tpu.memory_space<vmem>>, vector<2x64xf32>
    tpu.vector_store %arg6[%c0_18, %c64], %55 {strides = array<i32>} : memref<2x512xf32, #tpu.memory_space<vmem>>, vector<2x64xf32>,
    %cst_19 = arith.constant dense<0.000000e+00> : vector<2x24xf32>
    %57 = tpu.matmul %52, %1, %cst_19 {dimension_numbers = #tpu.dot_dimension_numbers<[1], [0], [0], [1], [0, 0, 1, 1], [], []>} : vector<2x8xf32>, vector<8x24xf32>, vector<2x24xf32> -> vector<2x24xf32>
    %58 = vector.broadcast %3 : vector<1x24xf32> to vector<2x24xf32>
    %59 = arith.addf %57, %58 : vector<2x24xf32>
    %60 = vector.extract_strided_slice %59 {offsets = [0, 0], sizes = [2, 16], strides = [1, 1]} : vector<2x24xf32> to vector<2x16xf32>
    %61 = arith.negf %60 : vector<2x16xf32>
    %62 = math.exp %61 : vector<2x16xf32>
    %cst_20 = arith.constant 1.000000e+00 : f32
    %63 = vector.broadcast %cst_20 : f32 to vector<2x16xf32>
    %64 = arith.addf %63, %62 : vector<2x16xf32>
    %65 = arith.divf %63, %64 : vector<2x16xf32>
    %66 = vector.extract_strided_slice %65 {offsets = [0, 0], sizes = [2, 8], strides = [1, 1]} : vector<2x16xf32> to vector<2x8xf32>
    %67 = vector.extract_strided_slice %65 {offsets = [0, 8], sizes = [2, 8], strides = [1, 1]} : vector<2x16xf32> to vector<2x8xf32>
    %68 = vector.extract_strided_slice %59 {offsets = [0, 16], sizes = [2, 8], strides = [1, 1]} : vector<2x24xf32> to vector<2x8xf32>
    %69 = arith.mulf %66, %68 : vector<2x8xf32>
    %70 = vector.broadcast %4 : vector<1x8xf32> to vector<2x8xf32>
    %71 = arith.addf %70, %69 : vector<2x8xf32>
    %72 = math.tanh %71 : vector<2x8xf32>
    %cst_21 = arith.constant 1.000000e+00 : f32
    %73 = vector.broadcast %cst_21 : f32 to vector<2x8xf32>
    %74 = arith.subf %73, %67 : vector<2x8xf32>
    %75 = arith.mulf %74, %72 : vector<2x8xf32>
    %76 = arith.mulf %67, %52 : vector<2x8xf32>
    %77 = arith.addf %75, %76 : vector<2x8xf32>
    %cst_22 = arith.constant dense<0.000000e+00> : vector<2x64xf32>
    %78 = tpu.matmul %77, %5, %cst_22 {dimension_numbers = #tpu.dot_dimension_numbers<[1], [0], [0], [1], [0, 0, 1, 1], [], []>} : vector<2x8xf32>, vector<8x64xf32>, vector<2x64xf32> -> vector<2x64xf32>
    %79 = vector.broadcast %6 : vector<1x64xf32> to vector<2x64xf32>
    %80 = arith.addf %78, %79 : vector<2x64xf32>
    %c0_23 = arith.constant 0 : index
    %c128 = arith.constant 128 : index
    %81 = vector.load %arg6[%c0_23, %c128] : memref<2x512xf32, #tpu.memory_space<vmem>>, vector<2x64xf32>
    tpu.vector_store %arg6[%c0_23, %c128], %80 {strides = array<i32>} : memref<2x512xf32, #tpu.memory_space<vmem>>, vector<2x64xf32>,
    %cst_24 = arith.constant dense<0.000000e+00> : vector<2x24xf32>
    %82 = tpu.matmul %77, %1, %cst_24 {dimension_numbers = #tpu.dot_dimension_numbers<[1], [0], [0], [1], [0, 0, 1, 1], [], []>} : vector<2x8xf32>, vector<8x24xf32>, vector<2x24xf32> -> vector<2x24xf32>
    %83 = vector.broadcast %3 : vector<1x24xf32> to vector<2x24xf32>
    %84 = arith.addf %82, %83 : vector<2x24xf32>
    %85 = vector.extract_strided_slice %84 {offsets = [0, 0], sizes = [2, 16], strides = [1, 1]} : vector<2x24xf32> to vector<2x16xf32>
    %86 = arith.negf %85 : vector<2x16xf32>
    %87 = math.exp %86 : vector<2x16xf32>
    %cst_25 = arith.constant 1.000000e+00 : f32
    %88 = vector.broadcast %cst_25 : f32 to vector<2x16xf32>
    %89 = arith.addf %88, %87 : vector<2x16xf32>
    %90 = arith.divf %88, %89 : vector<2x16xf32>
    %91 = vector.extract_strided_slice %90 {offsets = [0, 0], sizes = [2, 8], strides = [1, 1]} : vector<2x16xf32> to vector<2x8xf32>
    %92 = vector.extract_strided_slice %90 {offsets = [0, 8], sizes = [2, 8], strides = [1, 1]} : vector<2x16xf32> to vector<2x8xf32>
    %93 = vector.extract_strided_slice %84 {offsets = [0, 16], sizes = [2, 8], strides = [1, 1]} : vector<2x24xf32> to vector<2x8xf32>
    %94 = arith.mulf %91, %93 : vector<2x8xf32>
    %95 = vector.broadcast %4 : vector<1x8xf32> to vector<2x8xf32>
    %96 = arith.addf %95, %94 : vector<2x8xf32>
    %97 = math.tanh %96 : vector<2x8xf32>
    %cst_26 = arith.constant 1.000000e+00 : f32
    %98 = vector.broadcast %cst_26 : f32 to vector<2x8xf32>
    %99 = arith.subf %98, %92 : vector<2x8xf32>
    %100 = arith.mulf %99, %97 : vector<2x8xf32>
    %101 = arith.mulf %92, %77 : vector<2x8xf32>
    %102 = arith.addf %100, %101 : vector<2x8xf32>
    %cst_27 = arith.constant dense<0.000000e+00> : vector<2x64xf32>
    %103 = tpu.matmul %102, %5, %cst_27 {dimension_numbers = #tpu.dot_dimension_numbers<[1], [0], [0], [1], [0, 0, 1, 1], [], []>} : vector<2x8xf32>, vector<8x64xf32>, vector<2x64xf32> -> vector<2x64xf32>
    %104 = vector.broadcast %6 : vector<1x64xf32> to vector<2x64xf32>
    %105 = arith.addf %103, %104 : vector<2x64xf32>
    %c0_28 = arith.constant 0 : index
    %c192 = arith.constant 192 : index
    %106 = vector.load %arg6[%c0_28, %c192] : memref<2x512xf32, #tpu.memory_space<vmem>>, vector<2x64xf32>
    tpu.vector_store %arg6[%c0_28, %c192], %105 {strides = array<i32>} : memref<2x512xf32, #tpu.memory_space<vmem>>, vector<2x64xf32>,
    %cst_29 = arith.constant dense<0.000000e+00> : vector<2x24xf32>
    %107 = tpu.matmul %102, %1, %cst_29 {dimension_numbers = #tpu.dot_dimension_numbers<[1], [0], [0], [1], [0, 0, 1, 1], [], []>} : vector<2x8xf32>, vector<8x24xf32>, vector<2x24xf32> -> vector<2x24xf32>
    %108 = vector.broadcast %3 : vector<1x24xf32> to vector<2x24xf32>
    %109 = arith.addf %107, %108 : vector<2x24xf32>
    %110 = vector.extract_strided_slice %109 {offsets = [0, 0], sizes = [2, 16], strides = [1, 1]} : vector<2x24xf32> to vector<2x16xf32>
    %111 = arith.negf %110 : vector<2x16xf32>
    %112 = math.exp %111 : vector<2x16xf32>
    %cst_30 = arith.constant 1.000000e+00 : f32
    %113 = vector.broadcast %cst_30 : f32 to vector<2x16xf32>
    %114 = arith.addf %113, %112 : vector<2x16xf32>
    %115 = arith.divf %113, %114 : vector<2x16xf32>
    %116 = vector.extract_strided_slice %115 {offsets = [0, 0], sizes = [2, 8], strides = [1, 1]} : vector<2x16xf32> to vector<2x8xf32>
    %117 = vector.extract_strided_slice %115 {offsets = [0, 8], sizes = [2, 8], strides = [1, 1]} : vector<2x16xf32> to vector<2x8xf32>
    %118 = vector.extract_strided_slice %109 {offsets = [0, 16], sizes = [2, 8], strides = [1, 1]} : vector<2x24xf32> to vector<2x8xf32>
    %119 = arith.mulf %116, %118 : vector<2x8xf32>
    %120 = vector.broadcast %4 : vector<1x8xf32> to vector<2x8xf32>
    %121 = arith.addf %120, %119 : vector<2x8xf32>
    %122 = math.tanh %121 : vector<2x8xf32>
    %cst_31 = arith.constant 1.000000e+00 : f32
    %123 = vector.broadcast %cst_31 : f32 to vector<2x8xf32>
    %124 = arith.subf %123, %117 : vector<2x8xf32>
    %125 = arith.mulf %124, %122 : vector<2x8xf32>
    %126 = arith.mulf %117, %102 : vector<2x8xf32>
    %127 = arith.addf %125, %126 : vector<2x8xf32>
    %cst_32 = arith.constant dense<0.000000e+00> : vector<2x64xf32>
    %128 = tpu.matmul %127, %5, %cst_32 {dimension_numbers = #tpu.dot_dimension_numbers<[1], [0], [0], [1], [0, 0, 1, 1], [], []>} : vector<2x8xf32>, vector<8x64xf32>, vector<2x64xf32> -> vector<2x64xf32>
    %129 = vector.broadcast %6 : vector<1x64xf32> to vector<2x64xf32>
    %130 = arith.addf %128, %129 : vector<2x64xf32>
    %c0_33 = arith.constant 0 : index
    %c256 = arith.constant 256 : index
    %131 = vector.load %arg6[%c0_33, %c256] : memref<2x512xf32, #tpu.memory_space<vmem>>, vector<2x64xf32>
    tpu.vector_store %arg6[%c0_33, %c256], %130 {strides = array<i32>} : memref<2x512xf32, #tpu.memory_space<vmem>>, vector<2x64xf32>,
    %cst_34 = arith.constant dense<0.000000e+00> : vector<2x24xf32>
    %132 = tpu.matmul %127, %1, %cst_34 {dimension_numbers = #tpu.dot_dimension_numbers<[1], [0], [0], [1], [0, 0, 1, 1], [], []>} : vector<2x8xf32>, vector<8x24xf32>, vector<2x24xf32> -> vector<2x24xf32>
    %133 = vector.broadcast %3 : vector<1x24xf32> to vector<2x24xf32>
    %134 = arith.addf %132, %133 : vector<2x24xf32>
    %135 = vector.extract_strided_slice %134 {offsets = [0, 0], sizes = [2, 16], strides = [1, 1]} : vector<2x24xf32> to vector<2x16xf32>
    %136 = arith.negf %135 : vector<2x16xf32>
    %137 = math.exp %136 : vector<2x16xf32>
    %cst_35 = arith.constant 1.000000e+00 : f32
    %138 = vector.broadcast %cst_35 : f32 to vector<2x16xf32>
    %139 = arith.addf %138, %137 : vector<2x16xf32>
    %140 = arith.divf %138, %139 : vector<2x16xf32>
    %141 = vector.extract_strided_slice %140 {offsets = [0, 0], sizes = [2, 8], strides = [1, 1]} : vector<2x16xf32> to vector<2x8xf32>
    %142 = vector.extract_strided_slice %140 {offsets = [0, 8], sizes = [2, 8], strides = [1, 1]} : vector<2x16xf32> to vector<2x8xf32>
    %143 = vector.extract_strided_slice %134 {offsets = [0, 16], sizes = [2, 8], strides = [1, 1]} : vector<2x24xf32> to vector<2x8xf32>
    %144 = arith.mulf %141, %143 : vector<2x8xf32>
    %145 = vector.broadcast %4 : vector<1x8xf32> to vector<2x8xf32>
    %146 = arith.addf %145, %144 : vector<2x8xf32>
    %147 = math.tanh %146 : vector<2x8xf32>
    %cst_36 = arith.constant 1.000000e+00 : f32
    %148 = vector.broadcast %cst_36 : f32 to vector<2x8xf32>
    %149 = arith.subf %148, %142 : vector<2x8xf32>
    %150 = arith.mulf %149, %147 : vector<2x8xf32>
    %151 = arith.mulf %142, %127 : vector<2x8xf32>
    %152 = arith.addf %150, %151 : vector<2x8xf32>
    %cst_37 = arith.constant dense<0.000000e+00> : vector<2x64xf32>
    %153 = tpu.matmul %152, %5, %cst_37 {dimension_numbers = #tpu.dot_dimension_numbers<[1], [0], [0], [1], [0, 0, 1, 1], [], []>} : vector<2x8xf32>, vector<8x64xf32>, vector<2x64xf32> -> vector<2x64xf32>
    %154 = vector.broadcast %6 : vector<1x64xf32> to vector<2x64xf32>
    %155 = arith.addf %153, %154 : vector<2x64xf32>
    %c0_38 = arith.constant 0 : index
    %c320 = arith.constant 320 : index
    %156 = vector.load %arg6[%c0_38, %c320] : memref<2x512xf32, #tpu.memory_space<vmem>>, vector<2x64xf32>
    tpu.vector_store %arg6[%c0_38, %c320], %155 {strides = array<i32>} : memref<2x512xf32, #tpu.memory_space<vmem>>, vector<2x64xf32>,
    %cst_39 = arith.constant dense<0.000000e+00> : vector<2x24xf32>
    %157 = tpu.matmul %152, %1, %cst_39 {dimension_numbers = #tpu.dot_dimension_numbers<[1], [0], [0], [1], [0, 0, 1, 1], [], []>} : vector<2x8xf32>, vector<8x24xf32>, vector<2x24xf32> -> vector<2x24xf32>
    %158 = vector.broadcast %3 : vector<1x24xf32> to vector<2x24xf32>
    %159 = arith.addf %157, %158 : vector<2x24xf32>
    %160 = vector.extract_strided_slice %159 {offsets = [0, 0], sizes = [2, 16], strides = [1, 1]} : vector<2x24xf32> to vector<2x16xf32>
    %161 = arith.negf %160 : vector<2x16xf32>
    %162 = math.exp %161 : vector<2x16xf32>
    %cst_40 = arith.constant 1.000000e+00 : f32
    %163 = vector.broadcast %cst_40 : f32 to vector<2x16xf32>
    %164 = arith.addf %163, %162 : vector<2x16xf32>
    %165 = arith.divf %163, %164 : vector<2x16xf32>
    %166 = vector.extract_strided_slice %165 {offsets = [0, 0], sizes = [2, 8], strides = [1, 1]} : vector<2x16xf32> to vector<2x8xf32>
    %167 = vector.extract_strided_slice %165 {offsets = [0, 8], sizes = [2, 8], strides = [1, 1]} : vector<2x16xf32> to vector<2x8xf32>
    %168 = vector.extract_strided_slice %159 {offsets = [0, 16], sizes = [2, 8], strides = [1, 1]} : vector<2x24xf32> to vector<2x8xf32>
    %169 = arith.mulf %166, %168 : vector<2x8xf32>
    %170 = vector.broadcast %4 : vector<1x8xf32> to vector<2x8xf32>
    %171 = arith.addf %170, %169 : vector<2x8xf32>
    %172 = math.tanh %171 : vector<2x8xf32>
    %cst_41 = arith.constant 1.000000e+00 : f32
    %173 = vector.broadcast %cst_41 : f32 to vector<2x8xf32>
    %174 = arith.subf %173, %167 : vector<2x8xf32>
    %175 = arith.mulf %174, %172 : vector<2x8xf32>
    %176 = arith.mulf %167, %152 : vector<2x8xf32>
    %177 = arith.addf %175, %176 : vector<2x8xf32>
    %cst_42 = arith.constant dense<0.000000e+00> : vector<2x64xf32>
    %178 = tpu.matmul %177, %5, %cst_42 {dimension_numbers = #tpu.dot_dimension_numbers<[1], [0], [0], [1], [0, 0, 1, 1], [], []>} : vector<2x8xf32>, vector<8x64xf32>, vector<2x64xf32> -> vector<2x64xf32>
    %179 = vector.broadcast %6 : vector<1x64xf32> to vector<2x64xf32>
    %180 = arith.addf %178, %179 : vector<2x64xf32>
    %c0_43 = arith.constant 0 : index
    %c384 = arith.constant 384 : index
    %181 = vector.load %arg6[%c0_43, %c384] : memref<2x512xf32, #tpu.memory_space<vmem>>, vector<2x64xf32>
    tpu.vector_store %arg6[%c0_43, %c384], %180 {strides = array<i32>} : memref<2x512xf32, #tpu.memory_space<vmem>>, vector<2x64xf32>,
    %cst_44 = arith.constant dense<0.000000e+00> : vector<2x24xf32>
    %182 = tpu.matmul %177, %1, %cst_44 {dimension_numbers = #tpu.dot_dimension_numbers<[1], [0], [0], [1], [0, 0, 1, 1], [], []>} : vector<2x8xf32>, vector<8x24xf32>, vector<2x24xf32> -> vector<2x24xf32>
    %183 = vector.broadcast %3 : vector<1x24xf32> to vector<2x24xf32>
    %184 = arith.addf %182, %183 : vector<2x24xf32>
    %185 = vector.extract_strided_slice %184 {offsets = [0, 0], sizes = [2, 16], strides = [1, 1]} : vector<2x24xf32> to vector<2x16xf32>
    %186 = arith.negf %185 : vector<2x16xf32>
    %187 = math.exp %186 : vector<2x16xf32>
    %cst_45 = arith.constant 1.000000e+00 : f32
    %188 = vector.broadcast %cst_45 : f32 to vector<2x16xf32>
    %189 = arith.addf %188, %187 : vector<2x16xf32>
    %190 = arith.divf %188, %189 : vector<2x16xf32>
    %191 = vector.extract_strided_slice %190 {offsets = [0, 0], sizes = [2, 8], strides = [1, 1]} : vector<2x16xf32> to vector<2x8xf32>
    %192 = vector.extract_strided_slice %190 {offsets = [0, 8], sizes = [2, 8], strides = [1, 1]} : vector<2x16xf32> to vector<2x8xf32>
    %193 = vector.extract_strided_slice %184 {offsets = [0, 16], sizes = [2, 8], strides = [1, 1]} : vector<2x24xf32> to vector<2x8xf32>
    %194 = arith.mulf %191, %193 : vector<2x8xf32>
    %195 = vector.broadcast %4 : vector<1x8xf32> to vector<2x8xf32>
    %196 = arith.addf %195, %194 : vector<2x8xf32>
    %197 = math.tanh %196 : vector<2x8xf32>
    %cst_46 = arith.constant 1.000000e+00 : f32
    %198 = vector.broadcast %cst_46 : f32 to vector<2x8xf32>
    %199 = arith.subf %198, %192 : vector<2x8xf32>
    %200 = arith.mulf %199, %197 : vector<2x8xf32>
    %201 = arith.mulf %192, %177 : vector<2x8xf32>
    %202 = arith.addf %200, %201 : vector<2x8xf32>
    %cst_47 = arith.constant dense<0.000000e+00> : vector<2x64xf32>
    %203 = tpu.matmul %202, %5, %cst_47 {dimension_numbers = #tpu.dot_dimension_numbers<[1], [0], [0], [1], [0, 0, 1, 1], [], []>} : vector<2x8xf32>, vector<8x64xf32>, vector<2x64xf32> -> vector<2x64xf32>
    %204 = vector.broadcast %6 : vector<1x64xf32> to vector<2x64xf32>
    %205 = arith.addf %203, %204 : vector<2x64xf32>
    %c0_48 = arith.constant 0 : index
    %c448 = arith.constant 448 : index
    %206 = vector.load %arg6[%c0_48, %c448] : memref<2x512xf32, #tpu.memory_space<vmem>>, vector<2x64xf32>
    tpu.vector_store %arg6[%c0_48, %c448], %205 {strides = array<i32>} : memref<2x512xf32, #tpu.memory_space<vmem>>, vector<2x64xf32>,
    return
  }
  func.func @transform_0(%arg0: i32) -> (i32, i32) {
    %c0_i32 = arith.constant 0 : i32
    %c0_i32_0 = arith.constant 0 : i32
    %c0_i32_1 = arith.constant 0 : i32
    return %c0_i32, %c0_i32_0 : i32, i32
  }
  func.func @transform_1(%arg0: i32) -> (i32, i32) {
    %c0_i32 = arith.constant 0 : i32
    %c0_i32_0 = arith.constant 0 : i32
    %c0_i32_1 = arith.constant 0 : i32
    return %c0_i32, %c0_i32_0 : i32, i32
  }
  func.func @transform_2(%arg0: i32) -> (i32, i32) {
    %c0_i32 = arith.constant 0 : i32
    %c0_i32_0 = arith.constant 0 : i32
    %c0_i32_1 = arith.constant 0 : i32
    return %c0_i32, %c0_i32_0 : i32, i32
  }
  func.func @transform_3(%arg0: i32) -> (i32, i32) {
    %c0_i32 = arith.constant 0 : i32
    %c0_i32_0 = arith.constant 0 : i32
    %c0_i32_1 = arith.constant 0 : i32
    return %c0_i32, %c0_i32_0 : i32, i32
  }
  func.func @transform_4(%arg0: i32) -> (i32, i32) {
    %c0_i32 = arith.constant 0 : i32
    %c0_i32_0 = arith.constant 0 : i32
    %c0_i32_1 = arith.constant 0 : i32
    return %c0_i32, %c0_i32_0 : i32, i32
  }
  func.func @transform_5(%arg0: i32) -> (i32, i32) {
    %c0_i32 = arith.constant 0 : i32
    %c0_i32_0 = arith.constant 0 : i32
    %c0_i32_1 = arith.constant 0 : i32
    return %c0_i32, %c0_i32_0 : i32, i32
  }
}

</mosaic_0001>

<bundles_post_ra>
// kernel: temporal_decoder_forward.1
= control target key start
LH: loop header
LB: loop body
LE: loop exit
PB: predicated region body
PF: predicated region fallthrough
CT: control target
= control target key end

     0   :  { %vm29_vm0 = vcmask 64512   ;;  %v1624_v0 = vmov 0.0   ;;  %vm1625_vm1 = vmmov 0   ;;  %s1626_s22 = smov 8   ;;  %v25_v3 = vlaneseq  ;;  %s1627_s23 = smov 112   ;;  %s1858_s1 = inlined_call_operand.vmem [shape: f32[8,24], index: 1, kind: input, shape index: {}]   ;;  %s1859_s0 = inlined_call_operand.vmem [shape: f32[2,8], index: 0, kind: input, shape index: {}]   ;;  %s1860_s2 = inlined_call_operand.vmem [shape: f32[2,24], index: 2, kind: input, shape index: {}]   ;;  %s1861_s3 = inlined_call_operand.vmem [shape: f32[8,64], index: 3, kind: input, shape index: {}]   ;;  %s1862_s4 = inlined_call_operand.vmem [shape: f32[1,64], index: 4, kind: input, shape index: {}]   ;;  %s1863_s5 = inlined_call_operand.vmem [shape: f32[2,512], index: 5, kind: output, shape index: {}]  }
   0x1   :  { %1489 = vmatprep.subr.mxu0 %v1624_v0  ;;  %v1665_v1 = vld [vmem:[%s1858_s1] sm:$0xff]  ;;  %1491 = vmatprep.mubr.msk.f32.mxu0 %vm1625_vm1, %v1624_v0  ;;  %s1628_s25 = smov 120   ;;  %vm212_vm2 = vcmask 517120   ;;  %s1630_s9 = smov 64   ;;  %vm391_vm3 = vcmask 1041920  }
   0x2   :  { %v20_v2 = vld [vmem:[%s1859_s0] sm:$0x3]  ;;  %1490 = vmatpush3.msra.mxu0 %v1665_v1  ;;  %1494 = vmatprep.subr.mxu1 %v1624_v0  ;;  %v1683_v4 = vshrl.u32 %v25_v3, 7 }
   0x3   :  { %126 = vrot.lane.b32.xlu1 %v20_v2, %s1626_s22  ;;  %1492 = vmatmul.mubr.msk.f32.vlgmr.msra.gmra.mrb[0].mxu0 %vm29_vm0, %v20_v2  ;;  %v22_v6 = vld [vmem:[%s1860_s2] sm:$0x3] }
   0x4   :  { %1499 = vmatprep.subr.mxu0 %v1624_v0  ;;  %1496 = vmatprep.mubr.msk.f32.mxu1 %vm1625_vm1, %v1624_v0  ;;  %v27_v5 = vsub.s32 0, %v1683_v4  ;;  %v116_v14 = vsub.s32 1, %v1683_v4  ;;  %v1700_v20 = vld [vmem:[%s1861_s3] sm:$0xff] }
   0x5   :  { %1500 = vmatpush3.msra.mxu0 %v1665_v1  ;;  %1501 = vmatprep.mubr.msk.f32.mxu0 %vm1625_vm1, %v1624_v0  ;;  %v1719_v29 = vld [vmem:[%s1862_s4] ss:$0 sm:$0xff] }
   0x6   :  { %1509 = vmatprep.subr.mxu0 %v1624_v0  ;;  %v1689_v7 = vrot.slane %v22_v6, %v27_v5  ;;  %v1694_v15 = vrot.slane %v22_v6, %v116_v14  ;;  %1495 = vmatpush3.msra.mxu1 %v1700_v20 }
   0x7   :  { %1504 = vmatprep.subr.mxu1 %v1624_v0 }
  0x75   :  { %v127_v22 = vpop.permute.xlu1 %126 }
  0xd6   :  { %v99_v8 = vpop.f32.mrb[0].mxu0 }
  0xd7   :  { %v100_v9 = vadd.f32 %v99_v8, %v1689_v7  ;;  %v1493_v10 = vpop.f32.mrb[1].mxu0 }
  0xd9   :  { %110 = vrot.lane.b32.xlu0 %v100_v9, %s1627_s23  ;;  %v1433_v11 = vmul.f32 -1.442695, %v100_v9 }
  0xdb   :  { %1576 = vpow2.f32 %v1433_v11 }
  0xe5   :  { %v1577_v12 = vpop.eup %1576 }
  0xe6   :  { %v106_v13 = vadd.f32 1.0, %v1577_v12 }
  0xe8   :  { %1578 = vrcp.f32 %v106_v13 }
  0xf2   :  { %v1579_v16 = vpop.eup %1578 }
  0xf3   :  { %v120_v23 = vsub.f32 1.0, %v1579_v16  ;;  %v129_v25 = vmul.f32 %v1579_v16, %v127_v22 }
 0x14b   :  { %v111_v17 = vpop.permute.xlu0 %110 }
 0x14c   :  { %v113_v18 = vmul.f32 %v1579_v16, %v111_v17 }
 0x14e   :  { %v118_v19 = vadd.f32 %v1694_v15, %v113_v18 }
 0x150   :  { %1580 = vtanh.f32 %v118_v19 }
 0x15a   :  { %v1581_v21 = vpop.eup %1580 }
 0x15b   :  { %122 = vrot.lane.b32.xlu0 %v1581_v21, %s1626_s22 }
 0x1cd   :  { %v123_v24 = vpop.permute.xlu0 %122 }
 0x1ce   :  { %v125_v26 = vmul.f32 %v123_v24, %v120_v23 }
 0x1d0   :  { %v130_v27 = vadd.f32 %v129_v25, %v125_v26 }
 0x1d2   :  { %138 = vrot.lane.b32.xlu1 %v130_v27, %s1628_s25 }
 0x244   :  { %v139_v28 = vpop.permute.xlu1 %138 }
 0x245   :  { %1497 = vmatmul.mubr.msk.f32.vlgmr.msra.gmra.mrb[0].mxu1 %vm29_vm0, %v139_v28  ;;  %1502 = vmatmul.mubr.msk.f32.vlgmr.msra.gmra.mrb[2].mxu0 %vm29_vm0, %v139_v28 }
 0x246   :  { %1510 = vmatpush3.msra.mxu0 %v1665_v1  ;;  %1505 = vmatpush3.msra.mxu1 %v1700_v20 }
 0x247   :  { %1506 = vmatprep.mubr.msk.f32.mxu1 %vm1625_vm1, %v1624_v0  ;;  %1511 = vmatprep.mubr.msk.f32.mxu0 %vm1625_vm1, %v1624_v0 }
 0x248   :  { %1519 = vmatprep.subr.mxu0 %v1624_v0  ;;  %1514 = vmatprep.subr.mxu1 %v1624_v0 }
 0x318   :  { %v208_v30 = vpop.f32.mrb[0].mxu1  ;;  %v280_v31 = vpop.f32.mrb[2].mxu0 }
 0x319   :  { %v209_v32 = vadd.f32 %v1719_v29, %v208_v30  ;;  %v281_v33 = vadd.f32 %v280_v31, %v1689_v7  ;;  %v1498_v34 = vpop.f32.mrb[1].mxu1  ;;  %v1503_v35 = vpop.f32.mrb[3].mxu0 }
 0x31b   :  { %213 = vst.msk [vmem:[%s1863_s5] sm:$0x3] %vm212_vm2, %v209_v32  ;;  %291 = vrot.lane.b32.xlu0 %v281_v33, %s1627_s23  ;;  %v1437_v36 = vmul.f32 -1.442695, %v281_v33 }
 0x31d   :  { %1582 = vpow2.f32 %v1437_v36 }
 0x327   :  { %v1583_v37 = vpop.eup %1582 }
 0x328   :  { %v287_v38 = vadd.f32 1.0, %v1583_v37 }
 0x32a   :  { %1584 = vrcp.f32 %v287_v38 }
 0x334   :  { %v1585_v39 = vpop.eup %1584 }
 0x335   :  { %v297_v44 = vsub.f32 1.0, %v1585_v39  ;;  %v303_v46 = vmul.f32 %v1585_v39, %v130_v27 }
 0x38d   :  { %v292_v40 = vpop.permute.xlu0 %291 }
 0x38e   :  { %v294_v41 = vmul.f32 %v1585_v39, %v292_v40 }
 0x390   :  { %v295_v42 = vadd.f32 %v294_v41, %v1694_v15 }
 0x392   :  { %1586 = vtanh.f32 %v295_v42 }
 0x39c   :  { %v1587_v43 = vpop.eup %1586 }
 0x39d   :  { %299 = vrot.lane.b32.xlu1 %v1587_v43, %s1626_s22 }
 0x40f   :  { %v300_v45 = vpop.permute.xlu1 %299 }
 0x410   :  { %v302_v47 = vmul.f32 %v300_v45, %v297_v44 }
 0x412   :  { %v304_v48 = vadd.f32 %v303_v46, %v302_v47 }
 0x414   :  { %306 = vrot.lane.b32.xlu0 %v304_v48, %s1628_s25 }
 0x486   :  { %v307_v49 = vpop.permute.xlu0 %306 }
 0x487   :  { %1507 = vmatmul.mubr.msk.f32.vlgmr.msra.gmra.mrb[2].mxu1 %vm29_vm0, %v307_v49  ;;  %1512 = vmatmul.mubr.msk.f32.vlgmr.msra.gmra.mrb[4].mxu0 %vm29_vm0, %v307_v49 }
 0x488   :  { %1520 = vmatpush3.msra.mxu0 %v1665_v1  ;;  %1515 = vmatpush3.msra.mxu1 %v1700_v20 }
 0x489   :  { %1516 = vmatprep.mubr.msk.f32.mxu1 %vm1625_vm1, %v1624_v0  ;;  %1521 = vmatprep.mubr.msk.f32.mxu0 %vm1625_vm1, %v1624_v0 }
 0x48a   :  { %1529 = vmatprep.subr.mxu0 %v1624_v0  ;;  %1524 = vmatprep.subr.mxu1 %v1624_v0 }
 0x55a   :  { %v1741_v50 = vpop.f32.mrb[2].mxu1  ;;  %v459_v51 = vpop.f32.mrb[4].mxu0 }
 0x55b   :  { %v460_v52 = vadd.f32 %v459_v51, %v1689_v7  ;;  %v1508_v53 = vpop.f32.mrb[3].mxu1  ;;  %v1513_v54 = vpop.f32.mrb[5].mxu0 }
 0x55d   :  { %470 = vrot.lane.b32.xlu1 %v460_v52, %s1627_s23  ;;  %v1440_v55 = vmul.f32 -1.442695, %v460_v52 }
 0x55f   :  { %1588 = vpow2.f32 %v1440_v55 }
 0x569   :  { %v1589_v56 = vpop.eup %1588 }
 0x56a   :  { %v466_v57 = vadd.f32 1.0, %v1589_v56 }
 0x56c   :  { %1590 = vrcp.f32 %v466_v57 }
 0x576   :  { %v1591_v58 = vpop.eup %1590 }
 0x577   :  { %v476_v63 = vsub.f32 1.0, %v1591_v58  ;;  %v482_v3 = vmul.f32 %v1591_v58, %v304_v48 }
 0x5cf   :  { %v471_v59 = vpop.permute.xlu1 %470 }
 0x5d0   :  { %v473_v60 = vmul.f32 %v1591_v58, %v471_v59 }
 0x5d2   :  { %v474_v61 = vadd.f32 %v473_v60, %v1694_v15 }
 0x5d4   :  { %1592 = vtanh.f32 %v474_v61 }
 0x5de   :  { %v1593_v62 = vpop.eup %1592 }
 0x5df   :  { %478 = vrot.lane.b32.xlu0 %v1593_v62, %s1626_s22 }
 0x651   :  { %v479_v2 = vpop.permute.xlu0 %478 }
 0x652   :  { %v481_v5 = vmul.f32 %v479_v2, %v476_v63 }
 0x654   :  { %v483_v6 = vadd.f32 %v482_v3, %v481_v5 }
 0x656   :  { %485 = vrot.lane.b32.xlu1 %v483_v6, %s1628_s25 }
 0x6c8   :  { %v486_v8 = vpop.permute.xlu1 %485 }
 0x6c9   :  { %1517 = vmatmul.mubr.msk.f32.vlgmr.msra.gmra.mrb[4].mxu1 %vm29_vm0, %v486_v8  ;;  %1522 = vmatmul.mubr.msk.f32.vlgmr.msra.gmra.mrb[6].mxu0 %vm29_vm0, %v486_v8 }
 0x6ca   :  { %1530 = vmatpush3.msra.mxu0 %v1665_v1  ;;  %1525 = vmatpush3.msra.mxu1 %v1700_v20 }
 0x6cb   :  { %1526 = vmatprep.mubr.msk.f32.mxu1 %vm1625_vm1, %v1624_v0  ;;  %1531 = vmatprep.mubr.msk.f32.mxu0 %vm1625_vm1, %v1624_v0 }
 0x6cc   :  { %1539 = vmatprep.subr.mxu0 %v1624_v0  ;;  %1534 = vmatprep.subr.mxu1 %v1624_v0 }
 0x79c   :  { %v555_v9 = vpop.f32.mrb[4].mxu1  ;;  %v626_v10 = vpop.f32.mrb[6].mxu0 }
 0x79d   :  { %v556_v11 = vadd.f32 %v1719_v29, %v555_v9  ;;  %v627_v12 = vadd.f32 %v626_v10, %v1689_v7  ;;  %v1518_v13 = vpop.f32.mrb[5].mxu1  ;;  %v1523_v14 = vpop.f32.mrb[7].mxu0 }
 0x79f   :  { %559 = vst.msk [vmem:[%s1863_s5 + $0x2] sm:$0x3] %vm212_vm2, %v556_v11  ;;  %637 = vrot.lane.b32.xlu0 %v627_v12, %s1627_s23  ;;  %v1443_v16 = vmul.f32 -1.442695, %v627_v12 }
 0x7a1   :  { %1594 = vpow2.f32 %v1443_v16 }
 0x7ab   :  { %v1595_v17 = vpop.eup %1594 }
 0x7ac   :  { %v633_v18 = vadd.f32 1.0, %v1595_v17 }
 0x7ae   :  { %1596 = vrcp.f32 %v633_v18 }
 0x7b8   :  { %v1597_v19 = vpop.eup %1596 }
 0x7b9   :  { %v643_v25 = vsub.f32 1.0, %v1597_v19  ;;  %v649_v27 = vmul.f32 %v1597_v19, %v483_v6 }
 0x811   :  { %v638_v21 = vpop.permute.xlu0 %637 }
 0x812   :  { %v640_v22 = vmul.f32 %v1597_v19, %v638_v21 }
 0x814   :  { %v641_v23 = vadd.f32 %v640_v22, %v1694_v15 }
 0x816   :  { %1598 = vtanh.f32 %v641_v23 }
 0x820   :  { %v1599_v24 = vpop.eup %1598 }
 0x821   :  { %645 = vrot.lane.b32.xlu1 %v1599_v24, %s1626_s22 }
 0x893   :  { %v646_v26 = vpop.permute.xlu1 %645 }
 0x894   :  { %v648_v28 = vmul.f32 %v646_v26, %v643_v25 }
 0x896   :  { %v650_v30 = vadd.f32 %v649_v27, %v648_v28 }
 0x898   :  { %652 = vrot.lane.b32.xlu0 %v650_v30, %s1628_s25 }
 0x90a   :  { %v653_v31 = vpop.permute.xlu0 %652 }
 0x90b   :  { %1527 = vmatmul.mubr.msk.f32.vlgmr.msra.gmra.mrb[6].mxu1 %vm29_vm0, %v653_v31  ;;  %1532 = vmatmul.mubr.msk.f32.vlgmr.msra.gmra.mrb[8].mxu0 %vm29_vm0, %v653_v31 }
 0x90c   :  { %1540 = vmatpush3.msra.mxu0 %v1665_v1  ;;  %1535 = vmatpush3.msra.mxu1 %v1700_v20 }
 0x90d   :  { %1536 = vmatprep.mubr.msk.f32.mxu1 %vm1625_vm1, %v1624_v0  ;;  %1541 = vmatprep.mubr.msk.f32.mxu0 %vm1625_vm1, %v1624_v0 }
 0x90e   :  { %1549 = vmatprep.subr.mxu0 %v1624_v0  ;;  %1544 = vmatprep.subr.mxu1 %v1624_v0 }
 0x9de   :  { %v1778_v32 = vpop.f32.mrb[6].mxu1  ;;  %v804_v33 = vpop.f32.mrb[8].mxu0 }
 0x9df   :  { %v805_v34 = vadd.f32 %v804_v33, %v1689_v7  ;;  %v1528_v35 = vpop.f32.mrb[7].mxu1  ;;  %v1533_v36 = vpop.f32.mrb[9].mxu0 }
 0x9e1   :  { %815 = vrot.lane.b32.xlu1 %v805_v34, %s1627_s23  ;;  %v1446_v37 = vmul.f32 -1.442695, %v805_v34 }
 0x9e3   :  { %1600 = vpow2.f32 %v1446_v37 }
 0x9ed   :  { %v1601_v38 = vpop.eup %1600 }
 0x9ee   :  { %v811_v39 = vadd.f32 1.0, %v1601_v38 }
 0x9f0   :  { %1602 = vrcp.f32 %v811_v39 }
 0x9fa   :  { %v1603_v40 = vpop.eup %1602 }
 0x9fb   :  { %v821_v45 = vsub.f32 1.0, %v1603_v40  ;;  %v827_v47 = vmul.f32 %v1603_v40, %v650_v30 }
 0xa53   :  { %v816_v41 = vpop.permute.xlu1 %815 }
 0xa54   :  { %v818_v42 = vmul.f32 %v1603_v40, %v816_v41 }
 0xa56   :  { %v819_v43 = vadd.f32 %v818_v42, %v1694_v15 }
 0xa58   :  { %1604 = vtanh.f32 %v819_v43 }
 0xa62   :  { %v1605_v44 = vpop.eup %1604 }
 0xa63   :  { %823 = vrot.lane.b32.xlu0 %v1605_v44, %s1626_s22 }
 0xad5   :  { %v824_v46 = vpop.permute.xlu0 %823 }
 0xad6   :  { %v826_v48 = vmul.f32 %v824_v46, %v821_v45 }
 0xad8   :  { %v828_v49 = vadd.f32 %v827_v47, %v826_v48  ;;  %v377_v47 = vadd.f32 %v1719_v29, %v1741_v50  ;;  %v723_v50 = vadd.f32 %v1719_v29, %v1778_v32 }
 0xada   :  { %830 = vrot.lane.b32.xlu1 %v828_v49, %s1628_s25 }
 0xb4c   :  { %v831_v51 = vpop.permute.xlu1 %830 }
 0xb4d   :  { %1537 = vmatmul.mubr.msk.f32.vlgmr.msra.gmra.mrb[8].mxu1 %vm29_vm0, %v831_v51  ;;  %1542 = vmatmul.mubr.msk.f32.vlgmr.msra.gmra.mrb[10].mxu0 %vm29_vm0, %v831_v51 }
 0xb4e   :  { %1550 = vmatpush3.msra.mxu0 %v1665_v1  ;;  %1545 = vmatpush3.msra.mxu1 %v1700_v20 }
 0xb4f   :  { %1546 = vmatprep.mubr.msk.f32.mxu1 %vm1625_vm1, %v1624_v0  ;;  %1551 = vmatprep.mubr.msk.f32.mxu0 %vm1625_vm1, %v1624_v0 }
 0xb50   :  { %1559 = vmatprep.subr.mxu0 %v1624_v0  ;;  %1554 = vmatprep.subr.mxu1 %v1624_v0 }
 0xc20   :  { %v900_v52 = vpop.f32.mrb[8].mxu1  ;;  %v971_v53 = vpop.f32.mrb[10].mxu0 }
 0xc21   :  { %v901_v54 = vadd.f32 %v1719_v29, %v900_v52  ;;  %v972_v55 = vadd.f32 %v971_v53, %v1689_v7  ;;  %v1538_v56 = vpop.f32.mrb[9].mxu1  ;;  %v1543_v57 = vpop.f32.mrb[11].mxu0 }
 0xc23   :  { %904 = vst.msk [vmem:[%s1863_s5 + $0x4] sm:$0x3] %vm212_vm2, %v901_v54  ;;  %982 = vrot.lane.b32.xlu0 %v972_v55, %s1627_s23  ;;  %v1449_v58 = vmul.f32 -1.442695, %v972_v55 }
 0xc25   :  { %1606 = vpow2.f32 %v1449_v58 }
 0xc2f   :  { %v1607_v59 = vpop.eup %1606 }
 0xc30   :  { %v978_v60 = vadd.f32 1.0, %v1607_v59 }
 0xc32   :  { %1608 = vrcp.f32 %v978_v60 }
 0xc3c   :  { %v1609_v61 = vpop.eup %1608 }
 0xc3d   :  { %v988_v5 = vsub.f32 1.0, %v1609_v61  ;;  %v994_v8 = vmul.f32 %v1609_v61, %v828_v49 }
 0xc95   :  { %v983_v62 = vpop.permute.xlu0 %982 }
 0xc96   :  { %v985_v63 = vmul.f32 %v1609_v61, %v983_v62 }
 0xc98   :  { %v986_v2 = vadd.f32 %v985_v63, %v1694_v15 }
 0xc9a   :  { %1610 = vtanh.f32 %v986_v2 }
 0xca4   :  { %v1611_v3 = vpop.eup %1610 }
 0xca5   :  { %990 = vrot.lane.b32.xlu1 %v1611_v3, %s1626_s22 }
 0xd17   :  { %v991_v6 = vpop.permute.xlu1 %990 }
 0xd18   :  { %v993_v9 = vmul.f32 %v991_v6, %v988_v5 }
 0xd1a   :  { %v995_v10 = vadd.f32 %v994_v8, %v993_v9 }
 0xd1c   :  { %997 = vrot.lane.b32.xlu0 %v995_v10, %s1628_s25 }
 0xd8e   :  { %v998_v11 = vpop.permute.xlu0 %997 }
 0xd8f   :  { %1547 = vmatmul.mubr.msk.f32.vlgmr.msra.gmra.mrb[10].mxu1 %vm29_vm0, %v998_v11  ;;  %1552 = vmatmul.mubr.msk.f32.vlgmr.msra.gmra.mrb[12].mxu0 %vm29_vm0, %v998_v11 }
 0xd90   :  { %1560 = vmatpush3.msra.mxu0 %v1665_v1  ;;  %1555 = vmatpush3.msra.mxu1 %v1700_v20 }
 0xd91   :  { %1556 = vmatprep.mubr.msk.f32.mxu1 %vm1625_vm1, %v1624_v0  ;;  %1561 = vmatprep.mubr.msk.f32.mxu0 %vm1625_vm1, %v1624_v0 }
 0xd92   :  { %1564 = vmatprep.subr.mxu1 %v1624_v0 }
 0xe62   :  { %v1067_v12 = vpop.f32.mrb[10].mxu1  ;;  %v1149_v13 = vpop.f32.mrb[12].mxu0 }
 0xe63   :  { %v1150_v14 = vadd.f32 %v1149_v13, %v1689_v7  ;;  %v1548_v16 = vpop.f32.mrb[11].mxu1  ;;  %v1553_v17 = vpop.f32.mrb[13].mxu0  ;;  %v1068_v52 = vadd.f32 %v1719_v29, %v1067_v12 }
 0xe65   :  { %1160 = vrot.lane.b32.xlu1 %v1150_v14, %s1627_s23  ;;  %v1452_v18 = vmul.f32 -1.442695, %v1150_v14 }
 0xe67   :  { %1612 = vpow2.f32 %v1452_v18 }
 0xe71   :  { %v1613_v1 = vpop.eup %1612 }
 0xe72   :  { %v1156_v19 = vadd.f32 1.0, %v1613_v1 }
 0xe74   :  { %1614 = vrcp.f32 %v1156_v19 }
 0xe7e   :  { %v1615_v21 = vpop.eup %1614 }
 0xe7f   :  { %v1166_v26 = vsub.f32 1.0, %v1615_v21  ;;  %v1172_v28 = vmul.f32 %v1615_v21, %v995_v10 }
 0xed7   :  { %v1161_v22 = vpop.permute.xlu1 %1160 }
 0xed8   :  { %v1163_v23 = vmul.f32 %v1615_v21, %v1161_v22 }
 0xeda   :  { %v1164_v24 = vadd.f32 %v1163_v23, %v1694_v15 }
 0xedc   :  { %1616 = vtanh.f32 %v1164_v24 }
 0xee6   :  { %v1617_v25 = vpop.eup %1616 }
 0xee7   :  { %1168 = vrot.lane.b32.xlu0 %v1617_v25, %s1626_s22 }
 0xf59   :  { %v1169_v27 = vpop.permute.xlu0 %1168 }
 0xf5a   :  { %v1171_v30 = vmul.f32 %v1169_v27, %v1166_v26 }
 0xf5c   :  { %v1173_v31 = vadd.f32 %v1172_v28, %v1171_v30 }
 0xf5e   :  { %1175 = vrot.lane.b32.xlu1 %v1173_v31, %s1628_s25 }
 0xfd0   :  { %v1176_v33 = vpop.permute.xlu1 %1175 }
 0xfd1   :  { %1557 = vmatmul.mubr.msk.f32.vlgmr.msra.gmra.mrb[12].mxu1 %vm29_vm0, %v1176_v33  ;;  %1562 = vmatmul.mubr.msk.f32.vlgmr.msra.gmra.mrb[14].mxu0 %vm29_vm0, %v1176_v33 }
 0xfd2   :  { %1565 = vmatpush3.msra.mxu1 %v1700_v20  ;;  %1566 = vmatprep.mubr.msk.f32.mxu1 %vm1625_vm1, %v1624_v0 }
0x10a4   :  { %v1245_v34 = vpop.f32.mrb[12].mxu1  ;;  %v1316_v35 = vpop.f32.mrb[14].mxu0 }
0x10a5   :  { %v1246_v36 = vadd.f32 %v1719_v29, %v1245_v34  ;;  %v1317_v37 = vadd.f32 %v1316_v35, %v1689_v7  ;;  %v1558_v38 = vpop.f32.mrb[13].mxu1  ;;  %v1563_v39 = vpop.f32.mrb[15].mxu0  ;;  %v1629_v7 = vmov 1983009808  }
0x10a6   :  { %v382_v45 = vunpack.c.l.s4 %v1629_v7 }
0x10a7   :  { %1249 = vst.msk [vmem:[%s1863_s5 + $0x6] sm:$0x3] %vm212_vm2, %v1246_v36  ;;  %1327 = vrot.lane.b32.xlu0 %v1317_v37, %s1627_s23  ;;  %v1455_v40 = vmul.f32 -1.442695, %v1317_v37 }
0x10a8   :  { %v383_v46 = vunpack.c.0.s8 %v382_v45 }
0x10a9   :  { %1618 = vpow2.f32 %v1455_v40 }
0x10aa   :  { %v386_v48 = vsub.s32 %v383_v46, %v1683_v4 }
0x10ac   :  { %v387_v51 = vrot.slane %v377_v47, %v386_v48  ;;  %v1078_v53 = vrot.slane %v1068_v52, %v386_v48  ;;  %v733_v58 = vrot.slane %v723_v50, %v386_v48 }
0x10b3   :  { %v1619_v20 = vpop.eup %1618 }
0x10b4   :  { %v1323_v41 = vadd.f32 1.0, %v1619_v20 }
0x10b6   :  { %1620 = vrcp.f32 %v1323_v41 }
0x10c0   :  { %v1621_v0 = vpop.eup %1620 }
0x10c1   :  { %v1339_v55 = vmul.f32 %v1621_v0, %v1173_v31 }
0x1119   :  { %v1328_v42 = vpop.permute.xlu0 %1327 }
0x111a   :  { %v1330_v43 = vmul.f32 %v1621_v0, %v1328_v42 }
0x111c   :  { %v1331_v44 = vadd.f32 %v1330_v43, %v1694_v15  ;;  %v1333_v15 = vsub.f32 1.0, %v1621_v0 }
0x111e   :  { %1622 = vtanh.f32 %v1331_v44 }
0x1128   :  { %v1623_v49 = vpop.eup %1622 }
0x1129   :  { %1335 = vrot.lane.b32.xlu1 %v1623_v49, %s1626_s22 }
0x112d   :  { %388 = vrot.lane.b32.xlu1 %v387_v51, %s1630_s9 }
0x1131   :  { %1079 = vrot.lane.b32.xlu1 %v1078_v53, %s1630_s9 }
0x119b   :  { %v1336_v54 = vpop.permute.xlu1 %1335 }
0x119c   :  { %v1338_v56 = vmul.f32 %v1336_v54, %v1333_v15 }
0x119e   :  { %v1340_v57 = vadd.f32 %v1339_v55, %v1338_v56 }
0x119f   :  { %v389_v4 = vpop.permute.xlu1 %388 }
0x11a0   :  { %392 = vst.msk [vmem:[%s1863_s5] sm:$0x3] %vm391_vm3, %v389_v4  ;;  %1342 = vrot.lane.b32.xlu0 %v1340_v57, %s1628_s25 }
0x11a3   :  { %v1080_v59 = vpop.permute.xlu1 %1079 }
0x11a4   :  { %1082 = vst.msk [vmem:[%s1863_s5 + $0x4] sm:$0x3] %vm391_vm3, %v1080_v59  ;;  %734 = vrot.lane.b32.xlu0 %v733_v58, %s1630_s9 }
0x1212   :  { %v1343_v60 = vpop.permute.xlu0 %1342 }
0x1213   :  { %1567 = vmatmul.mubr.msk.f32.vlgmr.msra.gmra.mrb[14].mxu1 %vm29_vm0, %v1343_v60 }
0x1216   :  { %v735_v32 = vpop.permute.xlu0 %734 }
0x1217   :  { %737 = vst.msk [vmem:[%s1863_s5 + $0x2] sm:$0x3] %vm391_vm3, %v735_v32 }
0x12e6   :  { %v1412_v61 = vpop.f32.mrb[14].mxu1 }
0x12e7   :  { %v1413_v62 = vadd.f32 %v1719_v29, %v1412_v61  ;;  %v1568_v63 = vpop.f32.mrb[15].mxu1 }
0x12e9   :  { %v1423_v2 = vrot.slane %v1413_v62, %v386_v48 }
0x12eb   :  { %1424 = vrot.lane.b32.xlu0 %v1423_v2, %s1630_s9 }
0x135d   :  { %v1425_v3 = vpop.permute.xlu0 %1424 }
0x135e   :  { %1427 = vst.msk [vmem:[%s1863_s5 + $0x6] sm:$0x3] %vm391_vm3, %v1425_v3 }

</bundles_post_ra>
